<compile_context>
chip_gen: v7x
topology: tpu7x:2x2x1
jax: 0.10.0
libtpu: 0.0.40
codegen_flags: <defaults>
</compile_context>

<pallas_src>
import math

import jax
import jax.numpy as jnp
from jax.experimental import pallas as pl
from jax.experimental.pallas import tpu as pltpu

_LANE = 128      # lane width: hidden dims padded to multiples of this
_SUBLANE = 8     # f32 sublane: batch tiles are multiples of this


def _round_up(n: int, m: int) -> int:
    return ((n + m - 1) // m) * m


def _mtn_kernel(x_ref, w1_ref, b1_ref, w2_ref, b2_ref, wo_ref, bo_ref, out_ref):
    # Activation cast fused into the kernel (no extra wrapper pass over x).
    x = x_ref[...].astype(w1_ref.dtype)
    # Layer 1: Dense (bf16 MXU inputs, f32 accumulate) + bias + ReLU in f32.
    h = jnp.dot(x, w1_ref[...], preferred_element_type=jnp.float32)
    h = jnp.maximum(h + b1_ref[...], 0.0)
    # Layer 2: Dense + bias + ReLU (Dropout == identity in eval mode).
    h = jnp.dot(h.astype(w2_ref.dtype), w2_ref[...],
                preferred_element_type=jnp.float32)
    h = jnp.maximum(h + b2_ref[...], 0.0)
    # Regression head: Dense, true (un-padded) output width -> exact-size store.
    y = jnp.dot(h.astype(wo_ref.dtype), wo_ref[...],
                preferred_element_type=jnp.float32)
    out_ref[...] = (y + bo_ref[...]).astype(out_ref.dtype)


def _vmem_limit_bytes() -> int:
    # Chip-aware VMEM budget: ~3/4 of physical VMEM, capped at 112 MiB.
    # v5e/v6e (128 MiB) -> 96 MiB; v7x (64 MiB per TC) -> 48 MiB.
    try:
        cap = pltpu.get_tpu_info().vmem_capacity_bytes
    except Exception:
        cap = 64 << 20    # conservative default (v7x-safe)
    return max(32 << 20, min(112 << 20, (cap * 3) // 4))


def _forward(x, w1, b1, w2, b2, wo, bo, TB, out_dim, single_buffer_weights):
    B, F = x.shape
    H1p, H2p = w1.shape[1], w2.shape[1]
    n_blocks = pl.cdiv(B, TB)

    if single_buffer_weights:
        # Constant index map + single buffer: fetched once, half the VMEM.
        res = lambda shape: pl.BlockSpec(shape, lambda i: (0, 0),
                                         pipeline_mode=pl.Buffered(1))
    else:
        res = lambda shape: pl.BlockSpec(shape, lambda i: (0, 0))

    cost = pl.CostEstimate(
        flops=2 * B * (F * H1p + H1p * H2p + H2p * out_dim),
        transcendentals=0,
        bytes_accessed=(x.size * x.dtype.itemsize
                        + (w1.size + w2.size + wo.size) * w1.dtype.itemsize
                        + (b1.size + b2.size + bo.size) * 4
                        + B * out_dim * 4),
    )

    return pl.pallas_call(
        _mtn_kernel,
        out_shape=jax.ShapeDtypeStruct((B, out_dim), jnp.float32),
        grid=(n_blocks,),
        in_specs=[
            pl.BlockSpec((TB, F), lambda i: (i, 0)),   # x: batch-tiled (ragged tail OK)
            res((F, H1p)),      # w1: VMEM-resident
            res((1, H1p)),      # b1
            res((H1p, H2p)),    # w2
            res((1, H2p)),      # b2
            res((H2p, out_dim)),  # wo (un-padded output dim)
            res((1, out_dim)),    # bo
        ],
        out_specs=pl.BlockSpec((TB, out_dim), lambda i: (i, 0)),
        compiler_params=pltpu.CompilerParams(
            dimension_semantics=("parallel",),          # megacore on v7x
            vmem_limit_bytes=_vmem_limit_bytes(),
        ),
        cost_estimate=cost,
    )(x, w1, b1, w2, b2, wo, bo)


def multi_target_network(x, w1, b1, w2, b2, wo, bo, *, output_size=None,
                         block_b: int = 512):
    """Fused forward pass.

    x: [B, F] float.  Weights are the params produced by init_params:
    w*: [in, out] bf16 (hidden dims zero-padded to 128), b*: [1, out] f32.
    Returns predictions [B, out_dim] float32.
    """
    B, F = x.shape
    out_dim = wo.shape[1] if output_size is None else output_size
    if out_dim != wo.shape[1]:
        raise ValueError("head weights are stored un-padded; output_size must "
                         f"match wo.shape[1] ({wo.shape[1]})")

    # Batch tiling: TB multiple of 8, capped at block_b; force >= 2 grid blocks
    # when the batch allows it so the "parallel" axis can shard across v7x's
    # two TensorCores (one extra ~0.35us grid step on v5e/v6e, harmless).
    TB = min(block_b, _round_up(B, _SUBLANE))
    if B > _SUBLANE and pl.cdiv(B, TB) < 2:
        TB = max(_SUBLANE, _round_up(-(-B // 2), _SUBLANE))

    # TODO(synk): when (F*H1p + H1p*H2p + H2p*out_dim) resident weights
    # approach the VMEM budget (large F on v7x's 64 MiB parts), tile layer 1
    # over F with an extra "arbitrary" grid axis instead of keeping w1 whole.
    # TODO(synk): for best MXU K-packing, pad F to a multiple of 128 upstream
    # (zero feature cols + zero w1 rows keep the math exact).

    try:
        return _forward(x, w1, b1, w2, b2, wo, bo, TB, out_dim,
                        single_buffer_weights=True)
    except Exception:
        # pl.Buffered(1) single-buffering unavailable on this jax version;
        # fall back to default double-buffered resident weights.
        return _forward(x, w1, b1, w2, b2, wo, bo, TB, out_dim,
                        single_buffer_weights=False)


def _kaiming_uniform(key, fan_in, fan_out, dtype):
    # nn.init.kaiming_uniform_(w, nonlinearity='relu'): gain = sqrt(2),
    # bound = gain * sqrt(3 / fan_in).  Stored [in, out] so kernel does x @ W.
    bound = math.sqrt(2.0) * math.sqrt(3.0 / fan_in)
    w = jax.random.uniform(key, (fan_in, fan_out), jnp.float32, -bound, bound)
    return w.astype(dtype)


def init_params(key, input_size, hidden_size, output_size,
                weight_dtype=jnp.bfloat16):
    """Params stored [in, out].  Hidden dims zero-padded to multiples of 128
    (lane-dense MXU tiles; zero pad + ReLU keeps the math exact).  The head
    output dim is NOT padded (exact-width HBM writeback)."""
    k1, k2, k3, k4 = jax.random.split(key, 4)
    h1, h2 = hidden_size
    h1p, h2p = _round_up(h1, _LANE), _round_up(h2, _LANE)

    def pad2(w, rows, cols):
        return jnp.pad(w, ((0, rows - w.shape[0]), (0, cols - w.shape[1])))

    # Trunk: kaiming_uniform(relu) weights, zero biases (MLPNet._initialize_weights).
    w1 = pad2(_kaiming_uniform(k1, input_size, h1, weight_dtype), input_size, h1p)
    b1 = jnp.zeros((1, h1p), jnp.float32)
    w2 = pad2(_kaiming_uniform(k2, h1, h2, weight_dtype), h1p, h2p)
    b2 = jnp.zeros((1, h2p), jnp.float32)
    # Head: default torch nn.Linear init (uniform weight AND bias, 1/sqrt(fan_in)).
    bound = 1.0 / math.sqrt(h2)
    wo = jax.random.uniform(k3, (h2, output_size), jnp.float32, -bound, bound)
    wo = jnp.pad(wo.astype(weight_dtype), ((0, h2p - h2), (0, 0)))
    bo = jax.random.uniform(k4, (1, output_size), jnp.float32, -bound, bound)
    return w1, b1, w2, b2, wo, bo


if __name__ == "__main__":
    key = jax.random.PRNGKey(0)
    kx, kp = jax.random.split(key)

    # Small shapes consistent with the module's forward; batch=24 exercises
    # both the >=2-block megacore split and the ragged last batch block.
    batch = 24
    input_size = 16
    hidden_size = [32, 32]
    output_size = 4

    x = jax.random.normal(kx, (batch, input_size), jnp.float32)
    params = init_params(kp, input_size, hidden_size, output_size)

    out = multi_target_network(x, *params, output_size=output_size)
    out = jax.block_until_ready(out)

    # Plain-JAX reference with the same numerics (bf16 MXU inputs, f32
    # accumulate, eval-mode dropout == identity).
    w1, b1, w2, b2, wo, bo = params
    xb = x.astype(w1.dtype)
    h = jnp.maximum(jnp.dot(xb, w1, preferred_element_type=jnp.float32) + b1, 0.0)
    h = jnp.maximum(
        jnp.dot(h.astype(w2.dtype), w2, preferred_element_type=jnp.float32) + b2,
        0.0)
    ref = jnp.dot(h.astype(wo.dtype), wo, preferred_element_type=jnp.float32) + bo

    assert out.shape == (batch, output_size)
    assert out.dtype == jnp.float32
    assert jnp.allclose(out, ref, atol=2e-2, rtol=2e-2), "mismatch vs reference"

    print("KERNEL_OK")
</pallas_src>

<mosaic_0001>
module attributes {stable_mosaic.version = 11 : i64} {
  func.func @_mtn_kernel(%arg0: i32, %arg1: memref<16x16xf32, #tpu.memory_space<vmem>>, %arg2: memref<16x128xbf16, #tpu.memory_space<vmem>>, %arg3: memref<1x128xf32, #tpu.memory_space<vmem>>, %arg4: memref<128x128xbf16, #tpu.memory_space<vmem>>, %arg5: memref<1x128xf32, #tpu.memory_space<vmem>>, %arg6: memref<128x4xbf16, #tpu.memory_space<vmem>>, %arg7: memref<1x4xf32, #tpu.memory_space<vmem>>, %arg8: memref<16x4xf32, #tpu.memory_space<vmem>>) attributes {dimension_semantics = [#tpu.dimension_semantics<parallel>], iteration_bounds = array<i64: 2>, scalar_prefetch = 0 : i64, scratch_operands = 0 : i64, tpu.core_type = #tpu.core_type<tc>, window_params = [{transform_indices = @transform_0, window_bounds = array<i64: 16, 16>}, {pipeline_mode = #tpu.pipeline_mode<synchronous>, transform_indices = @transform_1, window_bounds = array<i64: 16, 128>}, {pipeline_mode = #tpu.pipeline_mode<synchronous>, transform_indices = @transform_2, window_bounds = array<i64: 1, 128>}, {pipeline_mode = #tpu.pipeline_mode<synchronous>, transform_indices = @transform_3, window_bounds = array<i64: 128, 128>}, {pipeline_mode = #tpu.pipeline_mode<synchronous>, transform_indices = @transform_4, window_bounds = array<i64: 1, 128>}, {pipeline_mode = #tpu.pipeline_mode<synchronous>, transform_indices = @transform_5, window_bounds = array<i64: 128, 4>}, {pipeline_mode = #tpu.pipeline_mode<synchronous>, transform_indices = @transform_6, window_bounds = array<i64: 1, 4>}, {transform_indices = @transform_7, window_bounds = array<i64: 16, 4>}]} {
    %c0 = arith.constant 0 : index
    %c0_0 = arith.constant 0 : index
    %0 = vector.load %arg1[%c0, %c0_0] : memref<16x16xf32, #tpu.memory_space<vmem>>, vector<16x16xf32>
    %1 = arith.truncf %0 : vector<16x16xf32> to vector<16x16xbf16>
    %c0_1 = arith.constant 0 : index
    %c0_2 = arith.constant 0 : index
    %2 = vector.load %arg2[%c0_1, %c0_2] : memref<16x128xbf16, #tpu.memory_space<vmem>>, vector<16x128xbf16>
    %cst = arith.constant dense<0.000000e+00> : vector<16x128xf32>
    %3 = tpu.matmul %1, %2, %cst {dimension_numbers = #tpu.dot_dimension_numbers<[1], [0], [0], [1], [0, 0, 1, 1], [], []>} : vector<16x16xbf16>, vector<16x128xbf16>, vector<16x128xf32> -> vector<16x128xf32>
    %c0_3 = arith.constant 0 : index
    %c0_4 = arith.constant 0 : index
    %4 = vector.load %arg3[%c0_3, %c0_4] : memref<1x128xf32, #tpu.memory_space<vmem>>, vector<1x128xf32>
    %5 = vector.broadcast %4 : vector<1x128xf32> to vector<16x128xf32>
    %6 = arith.addf %3, %5 : vector<16x128xf32>
    %cst_5 = arith.constant 0.000000e+00 : f32
    %7 = vector.broadcast %cst_5 : f32 to vector<16x128xf32>
    %8 = arith.maximumf %6, %7 : vector<16x128xf32>
    %9 = arith.truncf %8 : vector<16x128xf32> to vector<16x128xbf16>
    %c0_6 = arith.constant 0 : index
    %c0_7 = arith.constant 0 : index
    %10 = vector.load %arg4[%c0_6, %c0_7] : memref<128x128xbf16, #tpu.memory_space<vmem>>, vector<128x128xbf16>
    %cst_8 = arith.constant dense<0.000000e+00> : vector<16x128xf32>
    %11 = tpu.matmul %9, %10, %cst_8 {dimension_numbers = #tpu.dot_dimension_numbers<[1], [0], [0], [1], [0, 0, 1, 1], [], []>} : vector<16x128xbf16>, vector<128x128xbf16>, vector<16x128xf32> -> vector<16x128xf32>
    %c0_9 = arith.constant 0 : index
    %c0_10 = arith.constant 0 : index
    %12 = vector.load %arg5[%c0_9, %c0_10] : memref<1x128xf32, #tpu.memory_space<vmem>>, vector<1x128xf32>
    %13 = vector.broadcast %12 : vector<1x128xf32> to vector<16x128xf32>
    %14 = arith.addf %11, %13 : vector<16x128xf32>
    %cst_11 = arith.constant 0.000000e+00 : f32
    %15 = vector.broadcast %cst_11 : f32 to vector<16x128xf32>
    %16 = arith.maximumf %14, %15 : vector<16x128xf32>
    %17 = arith.truncf %16 : vector<16x128xf32> to vector<16x128xbf16>
    %c0_12 = arith.constant 0 : index
    %c0_13 = arith.constant 0 : index
    %18 = vector.load %arg6[%c0_12, %c0_13] : memref<128x4xbf16, #tpu.memory_space<vmem>>, vector<128x4xbf16>
    %cst_14 = arith.constant dense<0.000000e+00> : vector<16x4xf32>
    %19 = tpu.matmul %17, %18, %cst_14 {dimension_numbers = #tpu.dot_dimension_numbers<[1], [0], [0], [1], [0, 0, 1, 1], [], []>} : vector<16x128xbf16>, vector<128x4xbf16>, vector<16x4xf32> -> vector<16x4xf32>
    %c0_15 = arith.constant 0 : index
    %c0_16 = arith.constant 0 : index
    %20 = vector.load %arg7[%c0_15, %c0_16] : memref<1x4xf32, #tpu.memory_space<vmem>>, vector<1x4xf32>
    %21 = vector.broadcast %20 : vector<1x4xf32> to vector<16x4xf32>
    %22 = arith.addf %19, %21 : vector<16x4xf32>
    %c0_17 = arith.constant 0 : index
    %c0_18 = arith.constant 0 : index
    %23 = vector.load %arg8[%c0_17, %c0_18] : memref<16x4xf32, #tpu.memory_space<vmem>>, vector<16x4xf32>
    tpu.vector_store %arg8[%c0_17, %c0_18], %22 {strides = array<i32>} : memref<16x4xf32, #tpu.memory_space<vmem>>, vector<16x4xf32>,
    return
  }
  func.func @transform_0(%arg0: i32) -> (i32, i32) {
    %c0_i32 = arith.constant 0 : i32
    %c0_i32_0 = arith.constant 0 : i32
    return %arg0, %c0_i32 : i32, i32
  }
  func.func @transform_1(%arg0: i32) -> (i32, i32) {
    %c0_i32 = arith.constant 0 : i32
    %c0_i32_0 = arith.constant 0 : i32
    %c0_i32_1 = arith.constant 0 : i32
    return %c0_i32, %c0_i32_0 : i32, i32
  }
  func.func @transform_2(%arg0: i32) -> (i32, i32) {
    %c0_i32 = arith.constant 0 : i32
    %c0_i32_0 = arith.constant 0 : i32
    %c0_i32_1 = arith.constant 0 : i32
    return %c0_i32, %c0_i32_0 : i32, i32
  }
  func.func @transform_3(%arg0: i32) -> (i32, i32) {
    %c0_i32 = arith.constant 0 : i32
    %c0_i32_0 = arith.constant 0 : i32
    %c0_i32_1 = arith.constant 0 : i32
    return %c0_i32, %c0_i32_0 : i32, i32
  }
  func.func @transform_4(%arg0: i32) -> (i32, i32) {
    %c0_i32 = arith.constant 0 : i32
    %c0_i32_0 = arith.constant 0 : i32
    %c0_i32_1 = arith.constant 0 : i32
    return %c0_i32, %c0_i32_0 : i32, i32
  }
  func.func @transform_5(%arg0: i32) -> (i32, i32) {
    %c0_i32 = arith.constant 0 : i32
    %c0_i32_0 = arith.constant 0 : i32
    %c0_i32_1 = arith.constant 0 : i32
    return %c0_i32, %c0_i32_0 : i32, i32
  }
  func.func @transform_6(%arg0: i32) -> (i32, i32) {
    %c0_i32 = arith.constant 0 : i32
    %c0_i32_0 = arith.constant 0 : i32
    %c0_i32_1 = arith.constant 0 : i32
    return %c0_i32, %c0_i32_0 : i32, i32
  }
  func.func @transform_7(%arg0: i32) -> (i32, i32) {
    %c0_i32 = arith.constant 0 : i32
    %c0_i32_0 = arith.constant 0 : i32
    return %arg0, %c0_i32 : i32, i32
  }
}

module attributes {stable_mosaic.version = 11 : i64} {
  func.func @_mtn_kernel(%arg0: i32, %arg1: memref<16x16xf32, #tpu.memory_space<vmem>>, %arg2: memref<16x128xbf16, #tpu.memory_space<vmem>>, %arg3: memref<1x128xf32, #tpu.memory_space<vmem>>, %arg4: memref<128x128xbf16, #tpu.memory_space<vmem>>, %arg5: memref<1x128xf32, #tpu.memory_space<vmem>>, %arg6: memref<128x4xbf16, #tpu.memory_space<vmem>>, %arg7: memref<1x4xf32, #tpu.memory_space<vmem>>, %arg8: memref<16x4xf32, #tpu.memory_space<vmem>>) attributes {dimension_semantics = [#tpu.dimension_semantics<parallel>], iteration_bounds = array<i64: 2>, scalar_prefetch = 0 : i64, scratch_operands = 0 : i64, tpu.core_type = #tpu.core_type<tc>, window_params = [{transform_indices = @transform_0, window_bounds = array<i64: 16, 16>}, {pipeline_mode = #tpu.pipeline_mode<synchronous>, transform_indices = @transform_1, window_bounds = array<i64: 16, 128>}, {pipeline_mode = #tpu.pipeline_mode<synchronous>, transform_indices = @transform_2, window_bounds = array<i64: 1, 128>}, {pipeline_mode = #tpu.pipeline_mode<synchronous>, transform_indices = @transform_3, window_bounds = array<i64: 128, 128>}, {pipeline_mode = #tpu.pipeline_mode<synchronous>, transform_indices = @transform_4, window_bounds = array<i64: 1, 128>}, {pipeline_mode = #tpu.pipeline_mode<synchronous>, transform_indices = @transform_5, window_bounds = array<i64: 128, 4>}, {pipeline_mode = #tpu.pipeline_mode<synchronous>, transform_indices = @transform_6, window_bounds = array<i64: 1, 4>}, {transform_indices = @transform_7, window_bounds = array<i64: 16, 4>}]} {
    %c0 = arith.constant 0 : index
    %c0_0 = arith.constant 0 : index
    %0 = vector.load %arg1[%c0, %c0_0] : memref<16x16xf32, #tpu.memory_space<vmem>>, vector<16x16xf32>
    %1 = arith.truncf %0 : vector<16x16xf32> to vector<16x16xbf16>
    %c0_1 = arith.constant 0 : index
    %c0_2 = arith.constant 0 : index
    %2 = vector.load %arg2[%c0_1, %c0_2] : memref<16x128xbf16, #tpu.memory_space<vmem>>, vector<16x128xbf16>
    %cst = arith.constant dense<0.000000e+00> : vector<16x128xf32>
    %3 = tpu.matmul %1, %2, %cst {dimension_numbers = #tpu.dot_dimension_numbers<[1], [0], [0], [1], [0, 0, 1, 1], [], []>} : vector<16x16xbf16>, vector<16x128xbf16>, vector<16x128xf32> -> vector<16x128xf32>
    %c0_3 = arith.constant 0 : index
    %c0_4 = arith.constant 0 : index
    %4 = vector.load %arg3[%c0_3, %c0_4] : memref<1x128xf32, #tpu.memory_space<vmem>>, vector<1x128xf32>
    %5 = vector.broadcast %4 : vector<1x128xf32> to vector<16x128xf32>
    %6 = arith.addf %3, %5 : vector<16x128xf32>
    %cst_5 = arith.constant 0.000000e+00 : f32
    %7 = vector.broadcast %cst_5 : f32 to vector<16x128xf32>
    %8 = arith.maximumf %6, %7 : vector<16x128xf32>
    %9 = arith.truncf %8 : vector<16x128xf32> to vector<16x128xbf16>
    %c0_6 = arith.constant 0 : index
    %c0_7 = arith.constant 0 : index
    %10 = vector.load %arg4[%c0_6, %c0_7] : memref<128x128xbf16, #tpu.memory_space<vmem>>, vector<128x128xbf16>
    %cst_8 = arith.constant dense<0.000000e+00> : vector<16x128xf32>
    %11 = tpu.matmul %9, %10, %cst_8 {dimension_numbers = #tpu.dot_dimension_numbers<[1], [0], [0], [1], [0, 0, 1, 1], [], []>} : vector<16x128xbf16>, vector<128x128xbf16>, vector<16x128xf32> -> vector<16x128xf32>
    %c0_9 = arith.constant 0 : index
    %c0_10 = arith.constant 0 : index
    %12 = vector.load %arg5[%c0_9, %c0_10] : memref<1x128xf32, #tpu.memory_space<vmem>>, vector<1x128xf32>
    %13 = vector.broadcast %12 : vector<1x128xf32> to vector<16x128xf32>
    %14 = arith.addf %11, %13 : vector<16x128xf32>
    %cst_11 = arith.constant 0.000000e+00 : f32
    %15 = vector.broadcast %cst_11 : f32 to vector<16x128xf32>
    %16 = arith.maximumf %14, %15 : vector<16x128xf32>
    %17 = arith.truncf %16 : vector<16x128xf32> to vector<16x128xbf16>
    %c0_12 = arith.constant 0 : index
    %c0_13 = arith.constant 0 : index
    %18 = vector.load %arg6[%c0_12, %c0_13] : memref<128x4xbf16, #tpu.memory_space<vmem>>, vector<128x4xbf16>
    %cst_14 = arith.constant dense<0.000000e+00> : vector<16x4xf32>
    %19 = tpu.matmul %17, %18, %cst_14 {dimension_numbers = #tpu.dot_dimension_numbers<[1], [0], [0], [1], [0, 0, 1, 1], [], []>} : vector<16x128xbf16>, vector<128x4xbf16>, vector<16x4xf32> -> vector<16x4xf32>
    %c0_15 = arith.constant 0 : index
    %c0_16 = arith.constant 0 : index
    %20 = vector.load %arg7[%c0_15, %c0_16] : memref<1x4xf32, #tpu.memory_space<vmem>>, vector<1x4xf32>
    %21 = vector.broadcast %20 : vector<1x4xf32> to vector<16x4xf32>
    %22 = arith.addf %19, %21 : vector<16x4xf32>
    %c0_17 = arith.constant 0 : index
    %c0_18 = arith.constant 0 : index
    %23 = vector.load %arg8[%c0_17, %c0_18] : memref<16x4xf32, #tpu.memory_space<vmem>>, vector<16x4xf32>
    tpu.vector_store %arg8[%c0_17, %c0_18], %22 {strides = array<i32>} : memref<16x4xf32, #tpu.memory_space<vmem>>, vector<16x4xf32>,
    return
  }
  func.func @transform_0(%arg0: i32) -> (i32, i32) {
    %c0_i32 = arith.constant 0 : i32
    %c0_i32_0 = arith.constant 0 : i32
    return %arg0, %c0_i32 : i32, i32
  }
  func.func @transform_1(%arg0: i32) -> (i32, i32) {
    %c0_i32 = arith.constant 0 : i32
    %c0_i32_0 = arith.constant 0 : i32
    %c0_i32_1 = arith.constant 0 : i32
    return %c0_i32, %c0_i32_0 : i32, i32
  }
  func.func @transform_2(%arg0: i32) -> (i32, i32) {
    %c0_i32 = arith.constant 0 : i32
    %c0_i32_0 = arith.constant 0 : i32
    %c0_i32_1 = arith.constant 0 : i32
    return %c0_i32, %c0_i32_0 : i32, i32
  }
  func.func @transform_3(%arg0: i32) -> (i32, i32) {
    %c0_i32 = arith.constant 0 : i32
    %c0_i32_0 = arith.constant 0 : i32
    %c0_i32_1 = arith.constant 0 : i32
    return %c0_i32, %c0_i32_0 : i32, i32
  }
  func.func @transform_4(%arg0: i32) -> (i32, i32) {
    %c0_i32 = arith.constant 0 : i32
    %c0_i32_0 = arith.constant 0 : i32
    %c0_i32_1 = arith.constant 0 : i32
    return %c0_i32, %c0_i32_0 : i32, i32
  }
  func.func @transform_5(%arg0: i32) -> (i32, i32) {
    %c0_i32 = arith.constant 0 : i32
    %c0_i32_0 = arith.constant 0 : i32
    %c0_i32_1 = arith.constant 0 : i32
    return %c0_i32, %c0_i32_0 : i32, i32
  }
  func.func @transform_6(%arg0: i32) -> (i32, i32) {
    %c0_i32 = arith.constant 0 : i32
    %c0_i32_0 = arith.constant 0 : i32
    %c0_i32_1 = arith.constant 0 : i32
    return %c0_i32, %c0_i32_0 : i32, i32
  }
  func.func @transform_7(%arg0: i32) -> (i32, i32) {
    %c0_i32 = arith.constant 0 : i32
    %c0_i32_0 = arith.constant 0 : i32
    return %arg0, %c0_i32 : i32, i32
  }
}

</mosaic_0001>

<bundles_post_ra>
// kernel: tpu_custom_call.1
= control target key start
LH: loop header
LB: loop body
LE: loop exit
PB: predicated region body
PF: predicated region fallthrough
CT: control target
= control target key end

     0   :  { %s1167_s24 = smov 0   ;;  %s1169_s25 = smov 0   ;;  %s1333_s0 = inlined_call_operand.vmem [shape: f32[24,16], index: 0, kind: input, shape index: {}]   ;;  %s1334_s1 = inlined_call_operand.vmem [shape: bf16[16,128], index: 1, kind: input, shape index: {}]   ;;  %s1335_s2 = inlined_call_operand.vmem [shape: f32[1,128], index: 2, kind: input, shape index: {}]   ;;  %s1336_s3 = inlined_call_operand.vmem [shape: bf16[128,128], index: 3, kind: input, shape index: {}]   ;;  %s1337_s4 = inlined_call_operand.vmem [shape: f32[1,128], index: 4, kind: input, shape index: {}]   ;;  %s1338_s5 = inlined_call_operand.vmem [shape: bf16[128,4], index: 5, kind: input, shape index: {}]   ;;  %s1339_s6 = inlined_call_operand.vmem [shape: f32[1,4], index: 6, kind: input, shape index: {}]   ;;  %s1340_s7 = inlined_call_operand.vmem [shape: f32[24,4], index: 7, kind: output, shape index: {}]  }
   0x1   :  { %s1171_s26 = smov 0  }
   0x2 LB: > { %s1180_s27 = sadd.s32 4294967295, %s1091_s26   ;;  %s1182_s28 = sadd.s32 1, %s1091_s26   ;;  %s1091_s26 = sphi %s1171_s26, %s1344_s26   ;;  %s1087_s25 = sphi %s1169_s25, %s1343_s25   ;;  %s1083_s24 = sphi %s1167_s24, %s1342_s24  }
   0x3   : > { %s173_s29 = ssub.s32 %s1091_s26, %s1182_s28  ;;  %s176_s30 = sadd.s32 1, %s1087_s25 }
   0x4   : > { %p174_p0 = scmp.eq.s32.totalorder %s173_s29, 0  ;;  %p186_p1 = scmp.ne.s32.totalorder %s1087_s25, %s1083_s24 }
   0x5   : > { %p187_p2 = scmp.eq.s32.totalorder %s1180_s27, 1  ;;  %p819_p3 = scmp.ge.s32.totalorder %s1091_s26, 1 }
   0x6   : > { %s1190_s8 = scalar_select %p174_p0, %s1087_s25, %s176_s30  }
   0x7   : > { %p1192_p4 = por %p187_p2, %p186_p1  ;;  %p246_p5 = scmp.lt.s32.totalorder %s1091_s26, 3 }
   0x9   : > { %p247_p6 = pnand %p819_p3, %p246_p5 }
   0xa   : > { %v1020_v0 = vld [vmem:[%s1334_s1] sm:$0xff] (!%p247_p6)   ;;  %v1125_v1 = vmov (!%p247_p6), 0.0   ;;  %s1201_s12 = sshll.u32 (!%p247_p6), %s1180_s27, 1  ;;  %vm1126_vm0 = vmmov (!%p247_p6), 0   ;;  %v1022_v3 = vld [vmem:[%s1336_s3 + $0x8] sm:$0xff] (!%p247_p6)   ;;  %v1023_v4 = vld [vmem:[%s1336_s3 + $0x10] sm:$0xff] (!%p247_p6)  }
   0xb   : > { %250 = sbr.rel (%p247_p6) target bundleno = 731 (0x2db), region = 48  ;;  %884 = vmatprep.subr.bf16.mxu0 (!%p247_p6), %v1125_v1  ;;  %890 = vmatprep.subr.bf16.mxu1 (!%p247_p6), %v1125_v1  ;;  %v1021_v2 = vld [vmem:[%s1336_s3] sm:$0xff] (!%p247_p6)   ;;  %p286_p7 = scmp.lt.s32.totalorder (!%p247_p6), %s1201_s12, 2  ;;  %vm319_vm1 = vcmask (!%p247_p6), 130048   ;;  %v1024_v8 = vld [vmem:[%s1336_s3 + $0x18] sm:$0xff] (!%p247_p6)   ;;  %v1026_v10 = vld [vmem:[%s1336_s3 + $0x28] sm:$0xff] (!%p247_p6)  }
   0xc   : > { %885 = vmatpush3.bf16.msra.mxu0 (!%p247_p6), %v1020_v0  ;;  %886 = vmatprep.mubr.msk.bf16.mxu0 (!%p247_p6), %vm1126_vm0, %v1125_v1  ;;  %v1025_v9 = vld [vmem:[%s1336_s3 + $0x20] sm:$0xff] (!%p247_p6)   ;;  %v1027_v11 = vld [vmem:[%s1336_s3 + $0x30] sm:$0xff] (!%p247_p6)   ;;  %v1028_v12 = vld [vmem:[%s1336_s3 + $0x38] sm:$0xff] (!%p247_p6)   ;;  %s278_s22 = sand.u32 (!%p247_p6), 1, %s1083_s24   ;;  %vm594_vm2 = vcmask (!%p247_p6), 31744  }
   0xd   : > { %891 = vmatpush3.bf16.msra.mxu1 (!%p247_p6), %v1021_v2  ;;  %906 = vmatprep.mubr.msk.bf16.mxu1 (!%p247_p6), %vm1126_vm0, %v1125_v1  ;;  %v1029_v13 = vld [vmem:[%s1338_s5] sm:$0xff] (!%p247_p6)   ;;  %v1030_v14 = vld [vmem:[%s1338_s5 + $0x8] sm:$0xff] (!%p247_p6)   ;;  %v1031_v15 = vld [vmem:[%s1338_s5 + $0x10] sm:$0xff] (!%p247_p6)   ;;  %s820_s23 = sshll.u32 (!%p247_p6), %s278_s22, 4 }
   0xe   : > { %892 = vmatprep.subr.bf16.mxu1 (!%p247_p6), %v1125_v1  ;;  %910 = vmatprep.subr.bf16.mxu0 (!%p247_p6), %v1125_v1  ;;  %v1032_v16 = vld [vmem:[%s1338_s5 + $0x18] sm:$0xff] (!%p247_p6)   ;;  %v1033_v17 = vld [vmem:[%s1338_s5 + $0x20] sm:$0xff] (!%p247_p6)   ;;  %v1034_v18 = vld [vmem:[%s1338_s5 + $0x28] sm:$0xff] (!%p247_p6)   ;;  %s1288_s30 = scalar_lea.vmem (!%p247_p6), [#allocation2], %s820_s23  }
   0xf   : > { %v823_v19 = vld [vmem:[%s1335_s2] ss:$0 sm:$0xff] (!%p247_p6)  ;;  %v1035_v29 = vld [vmem:[%s1338_s5 + $0x30] sm:$0xff] (!%p247_p6)   ;;  %v1036_v30 = vld [vmem:[%s1338_s5 + $0x38] sm:$0xff] (!%p247_p6)  }
  0x10   : > { %v826_v31 = vld [vmem:[%s1337_s4] ss:$0 sm:$0xff] (!%p247_p6) }
  0x11   : > { %893 = vmatpush3.bf16.msra.mxu1 (!%p247_p6), %v1022_v3  ;;  %v835_v41 = vld [vmem:[%s1339_s6] ss:$0 sm:$0xff] (!%p247_p6) }
  0x12   : > { %s287_s17 = scalar_select %p286_p7, %s1201_s12, 2  ;;  %894 = vmatprep.subr.bf16.mxu1 %v1125_v1 }
  0x13   : > { %s605_s24 = ssub.s32 (%p1192_p4), 3, %s1201_s12  ;;  %s861_s10 = sshll.u32 (%p1192_p4), %s1180_s27, 4 }
  0x14   : > { %s822_s18 = sshll.u32 %s287_s17, 3  ;;  %p606_p8 = scmp.lt.s32.totalorder (%p1192_p4), %s605_s24, 2 }
  0x15   : > { %s289_s21 = scalar_lea.vmem %s1333_s0, %s822_s18  ;;  %895 = vmatpush3.bf16.msra.mxu1 %v1023_v4  ;;  %s1299_s14 = scalar_lea.vmem (%p1192_p4), %s1340_s7, %s861_s10  }
  0x16   : > { %v301_v5 = vld [vmem:[%s289_s21] sm:$0xff]  ;;  %v302_v6 = vld [vmem:[%s289_s21 + $0x8] sm:$0xff]  ;;  %896 = vmatprep.subr.bf16.mxu1 %v1125_v1 }
  0x17   : > { %v303_v7 = vpack.c.bf16 %v302_v6, %v301_v5 }
  0x19   : > { %887 = vmatmul.mubr.msk.bf16.vlgmr.msra.gmra.mrb[0].mxu0 %vm319_vm1, %v303_v7  ;;  %897 = vmatpush3.bf16.msra.mxu1 %v1024_v8 }
  0x1a   : > { %926 = vmatprep.mubr.msk.bf16.mxu0 %vm1126_vm0, %v1125_v1  ;;  %898 = vmatprep.subr.bf16.mxu1 %v1125_v1 }
  0x1b   : > { %911 = vmatpush3.bf16.msra.mxu0 %v1029_v13 }
  0x1c   : > { %912 = vmatprep.subr.bf16.mxu0 %v1125_v1 }
  0x1d   : > { %899 = vmatpush3.bf16.msra.mxu1 %v1025_v9 }
  0x1e   : > { %900 = vmatprep.subr.bf16.mxu1 %v1125_v1 }
  0x1f   : > { %913 = vmatpush3.bf16.msra.mxu0 %v1030_v14 }
  0x20   : > { %914 = vmatprep.subr.bf16.mxu0 %v1125_v1 }
  0x21   : > { %901 = vmatpush3.bf16.msra.mxu1 %v1026_v10 }
  0x22   : > { %902 = vmatprep.subr.bf16.mxu1 %v1125_v1 }
  0x23   : > { %915 = vmatpush3.bf16.msra.mxu0 %v1031_v15 }
  0x24   : > { %916 = vmatprep.subr.bf16.mxu0 %v1125_v1 }
  0x25   : > { %903 = vmatpush3.bf16.msra.mxu1 %v1027_v11 }
  0x26   : > { %904 = vmatprep.subr.bf16.mxu1 %v1125_v1 }
  0x27   : > { %917 = vmatpush3.bf16.msra.mxu0 %v1032_v16 }
  0x28   : > { %918 = vmatprep.subr.bf16.mxu0 %v1125_v1 }
  0x29   : > { %905 = vmatpush3.bf16.msra.mxu1 %v1028_v12 }
  0x2b   : > { %919 = vmatpush3.bf16.msra.mxu0 %v1033_v17 }
  0x2c   : > { %920 = vmatprep.subr.bf16.mxu0 %v1125_v1 }
  0x2f   : > { %921 = vmatpush3.bf16.msra.mxu0 %v1034_v18 }
  0x30   : > { %922 = vmatprep.subr.bf16.mxu0 %v1125_v1 }
  0x33   : > { %923 = vmatpush3.bf16.msra.mxu0 %v1035_v29 }
  0x34   : > { %924 = vmatprep.subr.bf16.mxu0 %v1125_v1 }
  0x37   : > { %925 = vmatpush3.bf16.msra.mxu0 %v1036_v30 }
  0xec   : > { %v357_v20 = vpop.f32.mrb[0].mxu0 }
  0xed   : > { %v358_v21 = vadd.f32 %v823_v19, %v357_v20  ;;  %v888_v22 = vpop.f32.mrb[1].mxu0 }
  0xee   : > { %v360_v23 = vpop.f32.mrb[2].mxu0 }
  0xef   : > { %v361_v24 = vadd.f32 %v823_v19, %v360_v23  ;;  %v889_v25 = vpop.f32.mrb[3].mxu0  ;;  %v364_v26 = vmax.f32 %v358_v21, 0.0 }
  0xf1   : > { %v365_v27 = vmax.f32 %v361_v24, 0.0 }
  0xf3   : > { %v366_v28 = vpack.c.bf16 %v365_v27, %v364_v26 }
  0xf5   : > { %907 = vmatmul.mubr.bf16.vlgmr.msra.gmra.mrb[0].mxu1 %v366_v28 }
 0x1c8   : > { %v472_v32 = vpop.f32.mrb[0].mxu1 }
 0x1c9   : > { %v473_v33 = vadd.f32 %v826_v31, %v472_v32  ;;  %v908_v34 = vpop.f32.mrb[1].mxu1 }
 0x1ca   : > { %v475_v35 = vpop.f32.mrb[2].mxu1 }
 0x1cb   : > { %v476_v36 = vadd.f32 %v826_v31, %v475_v35  ;;  %v909_v37 = vpop.f32.mrb[3].mxu1  ;;  %v479_v38 = vmax.f32 %v473_v33, 0.0 }
 0x1cd   : > { %v480_v39 = vmax.f32 %v476_v36, 0.0 }
 0x1cf   : > { %v481_v40 = vpack.c.bf16 %v480_v39, %v479_v38 }
 0x1d1   : > { %927 = vmatmul.mubr.bf16.vlgmr.msra.gmra.mrb[4].mxu0 %v481_v40 }
 0x2a3   : > { %603 = sbr.rel (!%p1192_p4) target bundleno = 731 (0x2db), region = 52 }
 0x2a4   : > { %v587_v42 = vpop.f32.mrb[4].mxu0 }
 0x2a5   : > { %v588_v43 = vadd.f32 %v835_v41, %v587_v42  ;;  %v928_v44 = vpop.f32.mrb[5].mxu0 }
 0x2a6   : > { %v590_v45 = vpop.f32.mrb[6].mxu0 }
 0x2a7   : > { %595 = vst.msk [vmem:[%s1288_s30] sm:$0xff] %vm594_vm2, %v588_v43  ;;  %v591_v46 = vadd.f32 %v835_v41, %v590_v45  ;;  %v929_v47 = vpop.f32.mrb[7].mxu0 }
 0x2a9   : > { %596 = vst.msk [vmem:[%s1288_s30 + $0x8] sm:$0xff] %vm594_vm2, %v591_v46 }
 0x2aa   : > { %s1346_s24 = smov (!%p606_p8, %s605_s24), 2 }
 0x2ab   : > { %s846_s15 = sshll.u32 %s1346_s24, 7 }
 0x2ac   : > { %p849_p9 = scmp.eq.s32.totalorder %s846_s15, 0 }
 0x2ad   : > { %s1305_s16 = sshrl.u32 (!%p849_p9), %s1346_s24, 1 }
 0x2ae   : > { %614 = sbr.rel (%p849_p9) target bundleno = 731 (0x2db), region = 56  ;;  %p850_p10 = scmp.le.s32.totalorder (!%p849_p9), %s1305_s16, 0 }
 0x2b5   : > { %772 = sbr.rel (%p850_p10) target bundleno = 710 (0x2c6), region = 132  ;;  %s1093_s27 = smov (!%p850_p10), %s1299_s14  }
 0x2b6   : > { %s1097_s9 = smov (!%p850_p10), %s1288_s30   ;;  %s1101_s12 = smov (!%p850_p10), 0  }
 0x2b7   : > { %s1105_s17 = smov (!%p850_p10), 0  }
 0x2bc LB: >> { %v678_v48 = vld [vmem:[%s1099_s9] sm:$0xff]  ;;  %v680_v49 = vld [vmem:[%s1099_s9 + $0x8] sm:$0xff]  ;;  %s682_s18 = sadd.s32 1, %s1103_s12  ;;  %s672_s17 = sadd.s32 1, %s1107_s17   ;;  %s1107_s17 = sphi %s1105_s17, %s672_s17   ;;  %s1103_s12 = sphi %s1101_s12, %s1102_s12   ;;  %s1099_s9 = sphi %s1097_s9, %s687_s9   ;;  %s1095_s27 = sphi %s1093_s27, %s688_s27  }
 0x2bd   : >> { %679 = vst [vmem:[%s1095_s27] sm:$0xff] %v678_v48  ;;  %681 = vst [vmem:[%s1095_s27 + $0x8] sm:$0xff] %v680_v49  ;;  %p683_p11 = scmp.ge.s32.totalorder %s682_s18, %s1305_s16  ;;  %p671_p12 = scmp.ge.s32.totalorder %s672_s17, %s1305_s16 }
 0x2bf   : >> { %s1348_s18 = smov (%p683_p11, %s682_s18), 0  ;;  %674 = sbr.rel (!%p671_p12) target bundleno = 700 (0x2bc), region = 138 }
 0x2c0   : >> { %s851_s19 = sshll.u32 %s1348_s18, 4  ;;  %s1102_s12 = smov %s1348_s18  }
 0x2c1   : >> { %s687_s9 = scalar_lea.vmem %s1288_s30, %s851_s19 [#allocation2]   ;;  %s688_s27 = scalar_lea.vmem %s1299_s14, %s851_s19  }
 0x2c6 PF: > { %s1315_s20 = sand.u32 1, %s1346_s24   ;;  %s862_s21 = sshll.u32 %s1305_s16, 4 }
 0x2c7   : > { %s693_s22 = scalar_lea.vmem %s1288_s30, %s862_s21 [#allocation2]   ;;  %s695_s23 = scalar_lea.vmem %s1299_s14, %s862_s21  }
 0x2c8   : > { %p856_p13 = scmp.le.s32.totalorder %s1315_s20, 0 }
 0x2c9   : > { %s1109_s26 = smov (!%p856_p13), %s695_s23   ;;  %s1113_s29 = smov (!%p856_p13), %s693_s22  }
 0x2ca   : > { %786 = sbr.rel (%p856_p13) target bundleno = 731 (0x2db), region = 143  ;;  %s1117_s10 = smov (!%p856_p13), 0  }
 0x2cb   : > { %s1121_s11 = smov (!%p856_p13), 0  }
 0x2d1 LB: >> { %v705_v50 = vld [vmem:[%s1115_s29] sm:$0xff]  ;;  %s707_s24 = sadd.s32 1, %s1119_s10  ;;  %s699_s11 = sadd.s32 1, %s1123_s11   ;;  %s1123_s11 = sphi %s1121_s11, %s699_s11   ;;  %s1119_s10 = sphi %s1117_s10, %s1118_s10   ;;  %s1115_s29 = sphi %s1113_s29, %s712_s29   ;;  %s1111_s26 = sphi %s1109_s26, %s713_s26  }
 0x2d2   : >> { %706 = vst [vmem:[%s1111_s26] sm:$0xff] %v705_v50  ;;  %p708_p0 = scmp.ge.s32.totalorder %s707_s24, %s1315_s20  ;;  %p698_p1 = scmp.ge.s32.totalorder %s699_s11, %s1315_s20 }
 0x2d4   : >> { %s1350_s24 = smov (%p708_p0, %s707_s24), 0  ;;  %701 = sbr.rel (!%p698_p1) target bundleno = 721 (0x2d1), region = 149 }
 0x2d5   : >> { %s857_s30 = sshll.u32 %s1350_s24, 3  ;;  %s1118_s10 = smov %s1350_s24  }
 0x2d6   : >> { %s712_s29 = scalar_lea.vmem %s693_s22, %s857_s30 [#allocation2]   ;;  %s713_s26 = scalar_lea.vmem %s695_s23, %s857_s30  }
 0x2db PF: > { %p14_p2 = scmp.ge.s32.totalorder %s1182_s28, 4   ;;  %s1342_s24 = smov %s1087_s25 }
 0x2dc   : > { %s1343_s25 = smov %s1190_s8  ;;  %s1344_s26 = smov %s1182_s28 }
 0x2dd   :  { %16 = sbr.rel (!%p14_p2) target bundleno = 2 (0x2), region = 160 }

// kernel: tpu_custom_call.1
= control target key start
LH: loop header
LB: loop body
LE: loop exit
PB: predicated region body
PF: predicated region fallthrough
CT: control target
= control target key end

     0   :  { %s1167_s24 = smov 0   ;;  %s1169_s25 = smov 0   ;;  %s1333_s0 = inlined_call_operand.vmem [shape: f32[24,16], index: 0, kind: input, shape index: {}]   ;;  %s1334_s1 = inlined_call_operand.vmem [shape: bf16[16,128], index: 1, kind: input, shape index: {}]   ;;  %s1335_s2 = inlined_call_operand.vmem [shape: f32[1,128], index: 2, kind: input, shape index: {}]   ;;  %s1336_s3 = inlined_call_operand.vmem [shape: bf16[128,128], index: 3, kind: input, shape index: {}]   ;;  %s1337_s4 = inlined_call_operand.vmem [shape: f32[1,128], index: 4, kind: input, shape index: {}]   ;;  %s1338_s5 = inlined_call_operand.vmem [shape: bf16[128,4], index: 5, kind: input, shape index: {}]   ;;  %s1339_s6 = inlined_call_operand.vmem [shape: f32[1,4], index: 6, kind: input, shape index: {}]   ;;  %s1340_s7 = inlined_call_operand.vmem [shape: f32[24,4], index: 7, kind: output, shape index: {}]  }
   0x1   :  { %s1171_s26 = smov 0  }
   0x2 LB: > { %s1180_s27 = sadd.s32 4294967295, %s1091_s26   ;;  %s1182_s28 = sadd.s32 1, %s1091_s26   ;;  %s1091_s26 = sphi %s1171_s26, %s1344_s26   ;;  %s1087_s25 = sphi %s1169_s25, %s1343_s25   ;;  %s1083_s24 = sphi %s1167_s24, %s1342_s24  }
   0x3   : > { %s173_s29 = ssub.s32 %s1091_s26, %s1182_s28  ;;  %s176_s30 = sadd.s32 1, %s1087_s25 }
   0x4   : > { %p174_p0 = scmp.eq.s32.totalorder %s173_s29, 0  ;;  %p186_p1 = scmp.ne.s32.totalorder %s1087_s25, %s1083_s24 }
   0x5   : > { %p187_p2 = scmp.eq.s32.totalorder %s1180_s27, 1  ;;  %p819_p3 = scmp.ge.s32.totalorder %s1091_s26, 1 }
   0x6   : > { %s1190_s8 = scalar_select %p174_p0, %s1087_s25, %s176_s30  }
   0x7   : > { %p1192_p4 = por %p187_p2, %p186_p1  ;;  %p246_p5 = scmp.lt.s32.totalorder %s1091_s26, 3 }
   0x9   : > { %p247_p6 = pnand %p819_p3, %p246_p5 }
   0xa   : > { %v1020_v0 = vld [vmem:[%s1334_s1] sm:$0xff] (!%p247_p6)   ;;  %v1125_v1 = vmov (!%p247_p6), 0.0   ;;  %s1201_s12 = sshll.u32 (!%p247_p6), %s1180_s27, 1  ;;  %vm1126_vm0 = vmmov (!%p247_p6), 0   ;;  %v1022_v3 = vld [vmem:[%s1336_s3 + $0x8] sm:$0xff] (!%p247_p6)   ;;  %v1023_v4 = vld [vmem:[%s1336_s3 + $0x10] sm:$0xff] (!%p247_p6)  }
   0xb   : > { %250 = sbr.rel (%p247_p6) target bundleno = 731 (0x2db), region = 48  ;;  %884 = vmatprep.subr.bf16.mxu0 (!%p247_p6), %v1125_v1  ;;  %890 = vmatprep.subr.bf16.mxu1 (!%p247_p6), %v1125_v1  ;;  %v1021_v2 = vld [vmem:[%s1336_s3] sm:$0xff] (!%p247_p6)   ;;  %p286_p7 = scmp.lt.s32.totalorder (!%p247_p6), %s1201_s12, 2  ;;  %vm319_vm1 = vcmask (!%p247_p6), 130048   ;;  %v1024_v8 = vld [vmem:[%s1336_s3 + $0x18] sm:$0xff] (!%p247_p6)   ;;  %v1026_v10 = vld [vmem:[%s1336_s3 + $0x28] sm:$0xff] (!%p247_p6)  }
   0xc   : > { %885 = vmatpush3.bf16.msra.mxu0 (!%p247_p6), %v1020_v0  ;;  %886 = vmatprep.mubr.msk.bf16.mxu0 (!%p247_p6), %vm1126_vm0, %v1125_v1  ;;  %v1025_v9 = vld [vmem:[%s1336_s3 + $0x20] sm:$0xff] (!%p247_p6)   ;;  %v1027_v11 = vld [vmem:[%s1336_s3 + $0x30] sm:$0xff] (!%p247_p6)   ;;  %v1028_v12 = vld [vmem:[%s1336_s3 + $0x38] sm:$0xff] (!%p247_p6)   ;;  %s278_s22 = sand.u32 (!%p247_p6), 1, %s1083_s24   ;;  %vm594_vm2 = vcmask (!%p247_p6), 31744  }
   0xd   : > { %891 = vmatpush3.bf16.msra.mxu1 (!%p247_p6), %v1021_v2  ;;  %906 = vmatprep.mubr.msk.bf16.mxu1 (!%p247_p6), %vm1126_vm0, %v1125_v1  ;;  %v1029_v13 = vld [vmem:[%s1338_s5] sm:$0xff] (!%p247_p6)   ;;  %v1030_v14 = vld [vmem:[%s1338_s5 + $0x8] sm:$0xff] (!%p247_p6)   ;;  %v1031_v15 = vld [vmem:[%s1338_s5 + $0x10] sm:$0xff] (!%p247_p6)   ;;  %s820_s23 = sshll.u32 (!%p247_p6), %s278_s22, 4 }
   0xe   : > { %892 = vmatprep.subr.bf16.mxu1 (!%p247_p6), %v1125_v1  ;;  %910 = vmatprep.subr.bf16.mxu0 (!%p247_p6), %v1125_v1  ;;  %v1032_v16 = vld [vmem:[%s1338_s5 + $0x18] sm:$0xff] (!%p247_p6)   ;;  %v1033_v17 = vld [vmem:[%s1338_s5 + $0x20] sm:$0xff] (!%p247_p6)   ;;  %v1034_v18 = vld [vmem:[%s1338_s5 + $0x28] sm:$0xff] (!%p247_p6)   ;;  %s1288_s30 = scalar_lea.vmem (!%p247_p6), [#allocation2], %s820_s23  }
   0xf   : > { %v823_v19 = vld [vmem:[%s1335_s2] ss:$0 sm:$0xff] (!%p247_p6)  ;;  %v1035_v29 = vld [vmem:[%s1338_s5 + $0x30] sm:$0xff] (!%p247_p6)   ;;  %v1036_v30 = vld [vmem:[%s1338_s5 + $0x38] sm:$0xff] (!%p247_p6)  }
  0x10   : > { %v826_v31 = vld [vmem:[%s1337_s4] ss:$0 sm:$0xff] (!%p247_p6) }
  0x11   : > { %893 = vmatpush3.bf16.msra.mxu1 (!%p247_p6), %v1022_v3  ;;  %v835_v41 = vld [vmem:[%s1339_s6] ss:$0 sm:$0xff] (!%p247_p6) }
  0x12   : > { %s287_s17 = scalar_select %p286_p7, %s1201_s12, 2  ;;  %894 = vmatprep.subr.bf16.mxu1 %v1125_v1 }
  0x13   : > { %s605_s24 = ssub.s32 (%p1192_p4), 3, %s1201_s12  ;;  %s861_s10 = sshll.u32 (%p1192_p4), %s1180_s27, 4 }
  0x14   : > { %s822_s18 = sshll.u32 %s287_s17, 3  ;;  %p606_p8 = scmp.lt.s32.totalorder (%p1192_p4), %s605_s24, 2 }
  0x15   : > { %s289_s21 = scalar_lea.vmem %s1333_s0, %s822_s18  ;;  %895 = vmatpush3.bf16.msra.mxu1 %v1023_v4  ;;  %s1299_s14 = scalar_lea.vmem (%p1192_p4), %s1340_s7, %s861_s10  }
  0x16   : > { %v301_v5 = vld [vmem:[%s289_s21] sm:$0xff]  ;;  %v302_v6 = vld [vmem:[%s289_s21 + $0x8] sm:$0xff]  ;;  %896 = vmatprep.subr.bf16.mxu1 %v1125_v1 }
  0x17   : > { %v303_v7 = vpack.c.bf16 %v302_v6, %v301_v5 }
  0x19   : > { %887 = vmatmul.mubr.msk.bf16.vlgmr.msra.gmra.mrb[0].mxu0 %vm319_vm1, %v303_v7  ;;  %897 = vmatpush3.bf16.msra.mxu1 %v1024_v8 }
  0x1a   : > { %926 = vmatprep.mubr.msk.bf16.mxu0 %vm1126_vm0, %v1125_v1  ;;  %898 = vmatprep.subr.bf16.mxu1 %v1125_v1 }
  0x1b   : > { %911 = vmatpush3.bf16.msra.mxu0 %v1029_v13 }
  0x1c   : > { %912 = vmatprep.subr.bf16.mxu0 %v1125_v1 }
  0x1d   : > { %899 = vmatpush3.bf16.msra.mxu1 %v1025_v9 }
  0x1e   : > { %900 = vmatprep.subr.bf16.mxu1 %v1125_v1 }
  0x1f   : > { %913 = vmatpush3.bf16.msra.mxu0 %v1030_v14 }
  0x20   : > { %914 = vmatprep.subr.bf16.mxu0 %v1125_v1 }
  0x21   : > { %901 = vmatpush3.bf16.msra.mxu1 %v1026_v10 }
  0x22   : > { %902 = vmatprep.subr.bf16.mxu1 %v1125_v1 }
  0x23   : > { %915 = vmatpush3.bf16.msra.mxu0 %v1031_v15 }
  0x24   : > { %916 = vmatprep.subr.bf16.mxu0 %v1125_v1 }
  0x25   : > { %903 = vmatpush3.bf16.msra.mxu1 %v1027_v11 }
  0x26   : > { %904 = vmatprep.subr.bf16.mxu1 %v1125_v1 }
  0x27   : > { %917 = vmatpush3.bf16.msra.mxu0 %v1032_v16 }
  0x28   : > { %918 = vmatprep.subr.bf16.mxu0 %v1125_v1 }
  0x29   : > { %905 = vmatpush3.bf16.msra.mxu1 %v1028_v12 }
  0x2b   : > { %919 = vmatpush3.bf16.msra.mxu0 %v1033_v17 }
  0x2c   : > { %920 = vmatprep.subr.bf16.mxu0 %v1125_v1 }
  0x2f   : > { %921 = vmatpush3.bf16.msra.mxu0 %v1034_v18 }
  0x30   : > { %922 = vmatprep.subr.bf16.mxu0 %v1125_v1 }
  0x33   : > { %923 = vmatpush3.bf16.msra.mxu0 %v1035_v29 }
  0x34   : > { %924 = vmatprep.subr.bf16.mxu0 %v1125_v1 }
  0x37   : > { %925 = vmatpush3.bf16.msra.mxu0 %v1036_v30 }
  0xec   : > { %v357_v20 = vpop.f32.mrb[0].mxu0 }
  0xed   : > { %v358_v21 = vadd.f32 %v823_v19, %v357_v20  ;;  %v888_v22 = vpop.f32.mrb[1].mxu0 }
  0xee   : > { %v360_v23 = vpop.f32.mrb[2].mxu0 }
  0xef   : > { %v361_v24 = vadd.f32 %v823_v19, %v360_v23  ;;  %v889_v25 = vpop.f32.mrb[3].mxu0  ;;  %v364_v26 = vmax.f32 %v358_v21, 0.0 }
  0xf1   : > { %v365_v27 = vmax.f32 %v361_v24, 0.0 }
  0xf3   : > { %v366_v28 = vpack.c.bf16 %v365_v27, %v364_v26 }
  0xf5   : > { %907 = vmatmul.mubr.bf16.vlgmr.msra.gmra.mrb[0].mxu1 %v366_v28 }
 0x1c8   : > { %v472_v32 = vpop.f32.mrb[0].mxu1 }
 0x1c9   : > { %v473_v33 = vadd.f32 %v826_v31, %v472_v32  ;;  %v908_v34 = vpop.f32.mrb[1].mxu1 }
 0x1ca   : > { %v475_v35 = vpop.f32.mrb[2].mxu1 }
 0x1cb   : > { %v476_v36 = vadd.f32 %v826_v31, %v475_v35  ;;  %v909_v37 = vpop.f32.mrb[3].mxu1  ;;  %v479_v38 = vmax.f32 %v473_v33, 0.0 }
 0x1cd   : > { %v480_v39 = vmax.f32 %v476_v36, 0.0 }
 0x1cf   : > { %v481_v40 = vpack.c.bf16 %v480_v39, %v479_v38 }
 0x1d1   : > { %927 = vmatmul.mubr.bf16.vlgmr.msra.gmra.mrb[4].mxu0 %v481_v40 }
 0x2a3   : > { %603 = sbr.rel (!%p1192_p4) target bundleno = 731 (0x2db), region = 52 }
 0x2a4   : > { %v587_v42 = vpop.f32.mrb[4].mxu0 }
 0x2a5   : > { %v588_v43 = vadd.f32 %v835_v41, %v587_v42  ;;  %v928_v44 = vpop.f32.mrb[5].mxu0 }
 0x2a6   : > { %v590_v45 = vpop.f32.mrb[6].mxu0 }
 0x2a7   : > { %595 = vst.msk [vmem:[%s1288_s30] sm:$0xff] %vm594_vm2, %v588_v43  ;;  %v591_v46 = vadd.f32 %v835_v41, %v590_v45  ;;  %v929_v47 = vpop.f32.mrb[7].mxu0 }
 0x2a9   : > { %596 = vst.msk [vmem:[%s1288_s30 + $0x8] sm:$0xff] %vm594_vm2, %v591_v46 }
 0x2aa   : > { %s1346_s24 = smov (!%p606_p8, %s605_s24), 2 }
 0x2ab   : > { %s846_s15 = sshll.u32 %s1346_s24, 7 }
 0x2ac   : > { %p849_p9 = scmp.eq.s32.totalorder %s846_s15, 0 }
 0x2ad   : > { %s1305_s16 = sshrl.u32 (!%p849_p9), %s1346_s24, 1 }
 0x2ae   : > { %614 = sbr.rel (%p849_p9) target bundleno = 731 (0x2db), region = 56  ;;  %p850_p10 = scmp.le.s32.totalorder (!%p849_p9), %s1305_s16, 0 }
 0x2b5   : > { %772 = sbr.rel (%p850_p10) target bundleno = 710 (0x2c6), region = 132  ;;  %s1093_s27 = smov (!%p850_p10), %s1299_s14  }
 0x2b6   : > { %s1097_s9 = smov (!%p850_p10), %s1288_s30   ;;  %s1101_s12 = smov (!%p850_p10), 0  }
 0x2b7   : > { %s1105_s17 = smov (!%p850_p10), 0  }
 0x2bc LB: >> { %v678_v48 = vld [vmem:[%s1099_s9] sm:$0xff]  ;;  %v680_v49 = vld [vmem:[%s1099_s9 + $0x8] sm:$0xff]  ;;  %s682_s18 = sadd.s32 1, %s1103_s12  ;;  %s672_s17 = sadd.s32 1, %s1107_s17   ;;  %s1107_s17 = sphi %s1105_s17, %s672_s17   ;;  %s1103_s12 = sphi %s1101_s12, %s1102_s12   ;;  %s1099_s9 = sphi %s1097_s9, %s687_s9   ;;  %s1095_s27 = sphi %s1093_s27, %s688_s27  }
 0x2bd   : >> { %679 = vst [vmem:[%s1095_s27] sm:$0xff] %v678_v48  ;;  %681 = vst [vmem:[%s1095_s27 + $0x8] sm:$0xff] %v680_v49  ;;  %p683_p11 = scmp.ge.s32.totalorder %s682_s18, %s1305_s16  ;;  %p671_p12 = scmp.ge.s32.totalorder %s672_s17, %s1305_s16 }
 0x2bf   : >> { %s1348_s18 = smov (%p683_p11, %s682_s18), 0  ;;  %674 = sbr.rel (!%p671_p12) target bundleno = 700 (0x2bc), region = 138 }
 0x2c0   : >> { %s851_s19 = sshll.u32 %s1348_s18, 4  ;;  %s1102_s12 = smov %s1348_s18  }
 0x2c1   : >> { %s687_s9 = scalar_lea.vmem %s1288_s30, %s851_s19 [#allocation2]   ;;  %s688_s27 = scalar_lea.vmem %s1299_s14, %s851_s19  }
 0x2c6 PF: > { %s1315_s20 = sand.u32 1, %s1346_s24   ;;  %s862_s21 = sshll.u32 %s1305_s16, 4 }
 0x2c7   : > { %s693_s22 = scalar_lea.vmem %s1288_s30, %s862_s21 [#allocation2]   ;;  %s695_s23 = scalar_lea.vmem %s1299_s14, %s862_s21  }
 0x2c8   : > { %p856_p13 = scmp.le.s32.totalorder %s1315_s20, 0 }
 0x2c9   : > { %s1109_s26 = smov (!%p856_p13), %s695_s23   ;;  %s1113_s29 = smov (!%p856_p13), %s693_s22  }
 0x2ca   : > { %786 = sbr.rel (%p856_p13) target bundleno = 731 (0x2db), region = 143  ;;  %s1117_s10 = smov (!%p856_p13), 0  }
 0x2cb   : > { %s1121_s11 = smov (!%p856_p13), 0  }
 0x2d1 LB: >> { %v705_v50 = vld [vmem:[%s1115_s29] sm:$0xff]  ;;  %s707_s24 = sadd.s32 1, %s1119_s10  ;;  %s699_s11 = sadd.s32 1, %s1123_s11   ;;  %s1123_s11 = sphi %s1121_s11, %s699_s11   ;;  %s1119_s10 = sphi %s1117_s10, %s1118_s10   ;;  %s1115_s29 = sphi %s1113_s29, %s712_s29   ;;  %s1111_s26 = sphi %s1109_s26, %s713_s26  }
 0x2d2   : >> { %706 = vst [vmem:[%s1111_s26] sm:$0xff] %v705_v50  ;;  %p708_p0 = scmp.ge.s32.totalorder %s707_s24, %s1315_s20  ;;  %p698_p1 = scmp.ge.s32.totalorder %s699_s11, %s1315_s20 }
 0x2d4   : >> { %s1350_s24 = smov (%p708_p0, %s707_s24), 0  ;;  %701 = sbr.rel (!%p698_p1) target bundleno = 721 (0x2d1), region = 149 }
 0x2d5   : >> { %s857_s30 = sshll.u32 %s1350_s24, 3  ;;  %s1118_s10 = smov %s1350_s24  }
 0x2d6   : >> { %s712_s29 = scalar_lea.vmem %s693_s22, %s857_s30 [#allocation2]   ;;  %s713_s26 = scalar_lea.vmem %s695_s23, %s857_s30  }
 0x2db PF: > { %p14_p2 = scmp.ge.s32.totalorder %s1182_s28, 4   ;;  %s1342_s24 = smov %s1087_s25 }
 0x2dc   : > { %s1343_s25 = smov %s1190_s8  ;;  %s1344_s26 = smov %s1182_s28 }
 0x2dd   :  { %16 = sbr.rel (!%p14_p2) target bundleno = 2 (0x2), region = 160 }

</bundles_post_ra>
